<compile_context>
chip_gen: v5e
topology: v5e:2x2
jax: 0.10.0
libtpu: 0.0.40
codegen_flags: <defaults>
</compile_context>

<pallas_src>
import math
from functools import partial

import numpy as np
import jax
import jax.numpy as jnp
from jax.experimental import pallas as pl
from jax.experimental.pallas import tpu as pltpu


def _mca_kernel(x_ref, mask_ref,
                wq_ref, bq_ref, wk_ref, bk_ref, wv_ref, bv_ref,
                wp_ref, bp_ref, o_ref, *, n_heads, head_dim, matmul_dtype):
    # x_ref:    (B*T, C)      flattened batch*seq rows
    # mask_ref: (B*T, B*T)    additive mask: 0 where attend, -inf where masked
    # w{q,k,v}: (H, C, D), b{q,k,v}: (H, 1, D)
    # wp:       (H, D, C), bp: (1, C)
    xf = x_ref[...]
    x_mm = xf.astype(matmul_dtype)
    mask_bias = mask_ref[...]                      # hoisted: shared by all heads
    scale = 1.0 / math.sqrt(head_dim)

    def mm(a, b):                                  # a @ b on the MXU, f32 accumulate
        return jnp.dot(a.astype(matmul_dtype), b.astype(matmul_dtype),
                       preferred_element_type=jnp.float32)

    def mm_nt(a, b):                               # a @ b.T without explicit transpose
        return jax.lax.dot_general(
            a.astype(matmul_dtype), b.astype(matmul_dtype),
            dimension_numbers=(((1,), (1,)), ((), ())),
            preferred_element_type=jnp.float32)

    acc = jnp.zeros(o_ref.shape, jnp.float32)
    for h in range(n_heads):                       # static unroll; n_heads is small
        qh = mm(x_mm, wq_ref[h]) + bq_ref[h]       # (B*T, D)
        kh = mm(x_mm, wk_ref[h]) + bk_ref[h]       # (B*T, D)
        vh = mm(x_mm, wv_ref[h]) + bv_ref[h]       # (B*T, D)

        s = mm_nt(qh, kh) * scale + mask_bias      # (B*T, B*T)

        # numerically-stable softmax along the last axis (kept in f32)
        m = jnp.max(s, axis=-1, keepdims=True)
        e = jnp.exp(s - m)
        denom = jnp.sum(e, axis=-1, keepdims=True)
        p = e * pl.reciprocal(denom, approx=True)  # EUP vrcp

        # fold the head concat into the output projection: acc += (p@v_h)@wp_h
        acc = acc + mm(mm(p, vh), wp_ref[h])       # (B*T, C)

    o_ref[...] = (acc + bp_ref[...]).astype(o_ref.dtype)


def masked_causal_attention(x, params, n_heads, matmul_dtype=jnp.float32):
    """x: (B, T, C) f32. params: (C, C) weights in (in, out) layout, (1, C) biases."""
    B, T, C = x.shape
    assert C % n_heads == 0
    D = C // n_heads
    BT = B * T

    # Per-head weight packing (trace-time; in a real model do this once at
    # parameter-load time).  Only the matmul operands are cast to matmul_dtype;
    # biases stay f32 (they add onto f32 accumulations).
    wq = params["wq"].reshape(C, n_heads, D).transpose(1, 0, 2).astype(matmul_dtype)
    wk = params["wk"].reshape(C, n_heads, D).transpose(1, 0, 2).astype(matmul_dtype)
    wv = params["wv"].reshape(C, n_heads, D).transpose(1, 0, 2).astype(matmul_dtype)
    wp = params["wp"].reshape(n_heads, D, C).astype(matmul_dtype)
    bq = params["bq"].reshape(n_heads, 1, D)
    bk = params["bk"].reshape(n_heads, 1, D)
    bv = params["bv"].reshape(n_heads, 1, D)
    bp = params["bp"]                               # (1, C)

    # Block-diagonal causal additive mask over flattened (batch*seq) rows/cols,
    # built host-side with numpy (no in-kernel integer division / selects).
    idx = np.arange(BT)
    same_batch = (idx[:, None] // T) == (idx[None, :] // T)
    causal = idx[None, :] <= idx[:, None]
    mask_bias = jnp.asarray(np.where(same_batch & causal, 0.0, -np.inf), jnp.float32)

    xf = x.reshape(BT, C)                           # fold batch into the sublane axis

    kernel = partial(_mca_kernel, n_heads=n_heads, head_dim=D,
                     matmul_dtype=matmul_dtype)

    def full(shape):
        return pl.BlockSpec(shape, lambda i, _s=shape: (0,) * len(_s))

    out = pl.pallas_call(
        kernel,
        out_shape=jax.ShapeDtypeStruct((BT, C), x.dtype),
        grid_spec=pltpu.PrefetchScalarGridSpec(
            num_scalar_prefetch=0,
            grid=(1,),                              # single step: everything in one VMEM block
            in_specs=[
                full((BT, C)),                      # x (flattened)
                full((BT, BT)),                     # additive block-diag causal mask
                full((n_heads, C, D)), full((n_heads, 1, D)),   # q_net
                full((n_heads, C, D)), full((n_heads, 1, D)),   # k_net
                full((n_heads, C, D)), full((n_heads, 1, D)),   # v_net
                full((n_heads, D, C)), full((1, C)),            # proj_net
            ],
            out_specs=full((BT, C)),
        ),
        compiler_params=pltpu.CompilerParams(
            dimension_semantics=("arbitrary",)),
    )(xf, mask_bias, wq, bq, wk, bk, wv, bv, wp, bp)

    return out.reshape(B, T, C)


def _reference(x, params, n_heads):
    """Pure-JAX reference matching the PyTorch forward (eval mode)."""
    B, T, C = x.shape
    D = C // n_heads
    q = x @ params["wq"] + params["bq"][0]
    k = x @ params["wk"] + params["bk"][0]
    v = x @ params["wv"] + params["bv"][0]
    q = q.reshape(B, T, n_heads, D).transpose(0, 2, 1, 3)
    k = k.reshape(B, T, n_heads, D).transpose(0, 2, 1, 3)
    v = v.reshape(B, T, n_heads, D).transpose(0, 2, 1, 3)
    w = jnp.einsum("bntd,bnsd->bnts", q, k) / math.sqrt(D)
    mask = jnp.tril(jnp.ones((T, T)))[None, None]
    w = jnp.where(mask == 0, -jnp.inf, w)
    p = jax.nn.softmax(w, axis=-1)
    att = jnp.einsum("bnts,bnsd->bntd", p, v)
    att = att.transpose(0, 2, 1, 3).reshape(B, T, C)
    return att @ params["wp"] + params["bp"][0]


if __name__ == "__main__":
    # Module hyperparams (consistent with the forward): h_dim=32, n_heads=4, max_T=8
    B, T, C = 2, 8, 32
    n_heads = 4

    key = jax.random.PRNGKey(0)
    keys = jax.random.split(key, 9)
    scale = 1.0 / math.sqrt(C)
    params = {
        "wq": jax.random.uniform(keys[0], (C, C), jnp.float32, -scale, scale),
        "bq": jax.random.uniform(keys[1], (1, C), jnp.float32, -scale, scale),
        "wk": jax.random.uniform(keys[2], (C, C), jnp.float32, -scale, scale),
        "bk": jax.random.uniform(keys[3], (1, C), jnp.float32, -scale, scale),
        "wv": jax.random.uniform(keys[4], (C, C), jnp.float32, -scale, scale),
        "bv": jax.random.uniform(keys[5], (1, C), jnp.float32, -scale, scale),
        "wp": jax.random.uniform(keys[6], (C, C), jnp.float32, -scale, scale),
        "bp": jax.random.uniform(keys[7], (1, C), jnp.float32, -scale, scale),
    }
    x = jax.random.normal(keys[8], (B, T, C), jnp.float32)

    ref = _reference(x, params, n_heads)

    # f32-operand path (default).  Tolerance allows a few ulps from the
    # EUP approximate reciprocal in the softmax denominator.
    out = jax.block_until_ready(masked_causal_attention(x, params, n_heads))
    assert out.shape == (B, T, C)
    assert jnp.allclose(out, ref, atol=5e-3, rtol=5e-3), "f32 mismatch vs reference"

    # bf16-operand / f32-accumulate path (v6e / v7x MXU fast path; softmax in f32).
    out_bf16 = jax.block_until_ready(
        masked_causal_attention(x, params, n_heads, matmul_dtype=jnp.bfloat16))
    assert out_bf16.shape == (B, T, C)
    assert jnp.allclose(out_bf16, ref, atol=5e-2, rtol=5e-2), "bf16 mismatch vs reference"

    print("KERNEL_OK")
</pallas_src>

<mosaic_0001>
module attributes {stable_mosaic.version = 11 : i64} {
  func.func @_mca_kernel(%arg0: i32, %arg1: memref<16x32xf32, #tpu.memory_space<vmem>>, %arg2: memref<16x16xf32, #tpu.memory_space<vmem>>, %arg3: memref<4x32x8xf32, #tpu.memory_space<vmem>>, %arg4: memref<4x1x8xf32, #tpu.memory_space<vmem>>, %arg5: memref<4x32x8xf32, #tpu.memory_space<vmem>>, %arg6: memref<4x1x8xf32, #tpu.memory_space<vmem>>, %arg7: memref<4x32x8xf32, #tpu.memory_space<vmem>>, %arg8: memref<4x1x8xf32, #tpu.memory_space<vmem>>, %arg9: memref<4x8x32xf32, #tpu.memory_space<vmem>>, %arg10: memref<1x32xf32, #tpu.memory_space<vmem>>, %arg11: memref<16x32xf32, #tpu.memory_space<vmem>>) attributes {dimension_semantics = [#tpu.dimension_semantics<arbitrary>], iteration_bounds = array<i64: 1>, scalar_prefetch = 0 : i64, scratch_operands = 0 : i64, tpu.core_type = #tpu.core_type<tc>, window_params = [{pipeline_mode = #tpu.pipeline_mode<synchronous>, transform_indices = @transform_0, window_bounds = array<i64: 16, 32>}, {pipeline_mode = #tpu.pipeline_mode<synchronous>, transform_indices = @transform_1, window_bounds = array<i64: 16, 16>}, {pipeline_mode = #tpu.pipeline_mode<synchronous>, transform_indices = @transform_2, window_bounds = array<i64: 4, 32, 8>}, {pipeline_mode = #tpu.pipeline_mode<synchronous>, transform_indices = @transform_3, window_bounds = array<i64: 4, 1, 8>}, {pipeline_mode = #tpu.pipeline_mode<synchronous>, transform_indices = @transform_4, window_bounds = array<i64: 4, 32, 8>}, {pipeline_mode = #tpu.pipeline_mode<synchronous>, transform_indices = @transform_5, window_bounds = array<i64: 4, 1, 8>}, {pipeline_mode = #tpu.pipeline_mode<synchronous>, transform_indices = @transform_6, window_bounds = array<i64: 4, 32, 8>}, {pipeline_mode = #tpu.pipeline_mode<synchronous>, transform_indices = @transform_7, window_bounds = array<i64: 4, 1, 8>}, {pipeline_mode = #tpu.pipeline_mode<synchronous>, transform_indices = @transform_8, window_bounds = array<i64: 4, 8, 32>}, {pipeline_mode = #tpu.pipeline_mode<synchronous>, transform_indices = @transform_9, window_bounds = array<i64: 1, 32>}, {pipeline_mode = #tpu.pipeline_mode<synchronous>, transform_indices = @transform_10, window_bounds = array<i64: 16, 32>}]} {
    %c0 = arith.constant 0 : index
    %c0_0 = arith.constant 0 : index
    %0 = vector.load %arg1[%c0, %c0_0] : memref<16x32xf32, #tpu.memory_space<vmem>>, vector<16x32xf32>
    %c0_1 = arith.constant 0 : index
    %c0_2 = arith.constant 0 : index
    %1 = vector.load %arg2[%c0_1, %c0_2] : memref<16x16xf32, #tpu.memory_space<vmem>>, vector<16x16xf32>
    %cst = arith.constant 0.000000e+00 : f32
    %2 = vector.broadcast %cst : f32 to vector<16x32xf32>
    %c0_3 = arith.constant 0 : index
    %c0_4 = arith.constant 0 : index
    %c0_5 = arith.constant 0 : index
    %3 = vector.load %arg3[%c0_3, %c0_4, %c0_5] : memref<4x32x8xf32, #tpu.memory_space<vmem>>, vector<1x32x8xf32>
    %4 = vector.shape_cast %3 : vector<1x32x8xf32> to vector<32x8xf32>
    %cst_6 = arith.constant dense<0.000000e+00> : vector<16x8xf32>
    %5 = tpu.matmul %0, %4, %cst_6 {dimension_numbers = #tpu.dot_dimension_numbers<[1], [0], [0], [1], [0, 0, 1, 1], [], []>} : vector<16x32xf32>, vector<32x8xf32>, vector<16x8xf32> -> vector<16x8xf32>
    %c0_7 = arith.constant 0 : index
    %c0_8 = arith.constant 0 : index
    %c0_9 = arith.constant 0 : index
    %6 = vector.load %arg4[%c0_7, %c0_8, %c0_9] : memref<4x1x8xf32, #tpu.memory_space<vmem>>, vector<1x1x8xf32>
    %7 = vector.shape_cast %6 : vector<1x1x8xf32> to vector<1x8xf32>
    %8 = vector.broadcast %7 : vector<1x8xf32> to vector<16x8xf32>
    %9 = arith.addf %5, %8 : vector<16x8xf32>
    %c0_10 = arith.constant 0 : index
    %c0_11 = arith.constant 0 : index
    %c0_12 = arith.constant 0 : index
    %10 = vector.load %arg5[%c0_10, %c0_11, %c0_12] : memref<4x32x8xf32, #tpu.memory_space<vmem>>, vector<1x32x8xf32>
    %11 = vector.shape_cast %10 : vector<1x32x8xf32> to vector<32x8xf32>
    %cst_13 = arith.constant dense<0.000000e+00> : vector<16x8xf32>
    %12 = tpu.matmul %0, %11, %cst_13 {dimension_numbers = #tpu.dot_dimension_numbers<[1], [0], [0], [1], [0, 0, 1, 1], [], []>} : vector<16x32xf32>, vector<32x8xf32>, vector<16x8xf32> -> vector<16x8xf32>
    %c0_14 = arith.constant 0 : index
    %c0_15 = arith.constant 0 : index
    %c0_16 = arith.constant 0 : index
    %13 = vector.load %arg6[%c0_14, %c0_15, %c0_16] : memref<4x1x8xf32, #tpu.memory_space<vmem>>, vector<1x1x8xf32>
    %14 = vector.shape_cast %13 : vector<1x1x8xf32> to vector<1x8xf32>
    %15 = vector.broadcast %14 : vector<1x8xf32> to vector<16x8xf32>
    %16 = arith.addf %12, %15 : vector<16x8xf32>
    %c0_17 = arith.constant 0 : index
    %c0_18 = arith.constant 0 : index
    %c0_19 = arith.constant 0 : index
    %17 = vector.load %arg7[%c0_17, %c0_18, %c0_19] : memref<4x32x8xf32, #tpu.memory_space<vmem>>, vector<1x32x8xf32>
    %18 = vector.shape_cast %17 : vector<1x32x8xf32> to vector<32x8xf32>
    %cst_20 = arith.constant dense<0.000000e+00> : vector<16x8xf32>
    %19 = tpu.matmul %0, %18, %cst_20 {dimension_numbers = #tpu.dot_dimension_numbers<[1], [0], [0], [1], [0, 0, 1, 1], [], []>} : vector<16x32xf32>, vector<32x8xf32>, vector<16x8xf32> -> vector<16x8xf32>
    %c0_21 = arith.constant 0 : index
    %c0_22 = arith.constant 0 : index
    %c0_23 = arith.constant 0 : index
    %20 = vector.load %arg8[%c0_21, %c0_22, %c0_23] : memref<4x1x8xf32, #tpu.memory_space<vmem>>, vector<1x1x8xf32>
    %21 = vector.shape_cast %20 : vector<1x1x8xf32> to vector<1x8xf32>
    %22 = vector.broadcast %21 : vector<1x8xf32> to vector<16x8xf32>
    %23 = arith.addf %19, %22 : vector<16x8xf32>
    %cst_24 = arith.constant dense<0.000000e+00> : vector<16x16xf32>
    %24 = tpu.matmul %9, %16, %cst_24 {dimension_numbers = #tpu.dot_dimension_numbers<[1], [1], [0], [0], [0, 0, 1, 0], [], []>} : vector<16x8xf32>, vector<16x8xf32>, vector<16x16xf32> -> vector<16x16xf32>
    %cst_25 = arith.constant 0.353553385 : f32
    %25 = vector.broadcast %cst_25 : f32 to vector<16x16xf32>
    %26 = arith.mulf %24, %25 : vector<16x16xf32>
    %27 = arith.addf %26, %1 : vector<16x16xf32>
    %cst_26 = arith.constant dense<0xFF800000> : vector<16xf32>
    %28 = vector.multi_reduction <maximumf>, %27, %cst_26 [1] : vector<16x16xf32> to vector<16xf32>
    %29 = vector.shape_cast %28 : vector<16xf32> to vector<16x1xf32>
    %30 = vector.broadcast %29 : vector<16x1xf32> to vector<16x16xf32>
    %31 = arith.subf %27, %30 : vector<16x16xf32>
    %32 = math.exp %31 : vector<16x16xf32>
    %cst_27 = arith.constant dense<0.000000e+00> : vector<16xf32>
    %33 = vector.multi_reduction <add>, %32, %cst_27 [1] : vector<16x16xf32> to vector<16xf32>
    %34 = vector.shape_cast %33 : vector<16xf32> to vector<16x1xf32>
    %35 = tpu.reciprocal %34 {approx = true} : vector<16x1xf32> -> vector<16x1xf32>
    %36 = vector.broadcast %35 : vector<16x1xf32> to vector<16x16xf32>
    %37 = arith.mulf %32, %36 : vector<16x16xf32>
    %cst_28 = arith.constant dense<0.000000e+00> : vector<16x8xf32>
    %38 = tpu.matmul %37, %23, %cst_28 {dimension_numbers = #tpu.dot_dimension_numbers<[1], [0], [0], [1], [0, 0, 1, 1], [], []>} : vector<16x16xf32>, vector<16x8xf32>, vector<16x8xf32> -> vector<16x8xf32>
    %c0_29 = arith.constant 0 : index
    %c0_30 = arith.constant 0 : index
    %c0_31 = arith.constant 0 : index
    %39 = vector.load %arg9[%c0_29, %c0_30, %c0_31] : memref<4x8x32xf32, #tpu.memory_space<vmem>>, vector<1x8x32xf32>
    %40 = vector.shape_cast %39 : vector<1x8x32xf32> to vector<8x32xf32>
    %cst_32 = arith.constant dense<0.000000e+00> : vector<16x32xf32>
    %41 = tpu.matmul %38, %40, %cst_32 {dimension_numbers = #tpu.dot_dimension_numbers<[1], [0], [0], [1], [0, 0, 1, 1], [], []>} : vector<16x8xf32>, vector<8x32xf32>, vector<16x32xf32> -> vector<16x32xf32>
    %42 = arith.addf %2, %41 : vector<16x32xf32>
    %c1 = arith.constant 1 : index
    %c0_33 = arith.constant 0 : index
    %c0_34 = arith.constant 0 : index
    %43 = vector.load %arg3[%c1, %c0_33, %c0_34] : memref<4x32x8xf32, #tpu.memory_space<vmem>>, vector<1x32x8xf32>
    %44 = vector.shape_cast %43 : vector<1x32x8xf32> to vector<32x8xf32>
    %cst_35 = arith.constant dense<0.000000e+00> : vector<16x8xf32>
    %45 = tpu.matmul %0, %44, %cst_35 {dimension_numbers = #tpu.dot_dimension_numbers<[1], [0], [0], [1], [0, 0, 1, 1], [], []>} : vector<16x32xf32>, vector<32x8xf32>, vector<16x8xf32> -> vector<16x8xf32>
    %c1_36 = arith.constant 1 : index
    %c0_37 = arith.constant 0 : index
    %c0_38 = arith.constant 0 : index
    %46 = vector.load %arg4[%c1_36, %c0_37, %c0_38] : memref<4x1x8xf32, #tpu.memory_space<vmem>>, vector<1x1x8xf32>
    %47 = vector.shape_cast %46 : vector<1x1x8xf32> to vector<1x8xf32>
    %48 = vector.broadcast %47 : vector<1x8xf32> to vector<16x8xf32>
    %49 = arith.addf %45, %48 : vector<16x8xf32>
    %c1_39 = arith.constant 1 : index
    %c0_40 = arith.constant 0 : index
    %c0_41 = arith.constant 0 : index
    %50 = vector.load %arg5[%c1_39, %c0_40, %c0_41] : memref<4x32x8xf32, #tpu.memory_space<vmem>>, vector<1x32x8xf32>
    %51 = vector.shape_cast %50 : vector<1x32x8xf32> to vector<32x8xf32>
    %cst_42 = arith.constant dense<0.000000e+00> : vector<16x8xf32>
    %52 = tpu.matmul %0, %51, %cst_42 {dimension_numbers = #tpu.dot_dimension_numbers<[1], [0], [0], [1], [0, 0, 1, 1], [], []>} : vector<16x32xf32>, vector<32x8xf32>, vector<16x8xf32> -> vector<16x8xf32>
    %c1_43 = arith.constant 1 : index
    %c0_44 = arith.constant 0 : index
    %c0_45 = arith.constant 0 : index
    %53 = vector.load %arg6[%c1_43, %c0_44, %c0_45] : memref<4x1x8xf32, #tpu.memory_space<vmem>>, vector<1x1x8xf32>
    %54 = vector.shape_cast %53 : vector<1x1x8xf32> to vector<1x8xf32>
    %55 = vector.broadcast %54 : vector<1x8xf32> to vector<16x8xf32>
    %56 = arith.addf %52, %55 : vector<16x8xf32>
    %c1_46 = arith.constant 1 : index
    %c0_47 = arith.constant 0 : index
    %c0_48 = arith.constant 0 : index
    %57 = vector.load %arg7[%c1_46, %c0_47, %c0_48] : memref<4x32x8xf32, #tpu.memory_space<vmem>>, vector<1x32x8xf32>
    %58 = vector.shape_cast %57 : vector<1x32x8xf32> to vector<32x8xf32>
    %cst_49 = arith.constant dense<0.000000e+00> : vector<16x8xf32>
    %59 = tpu.matmul %0, %58, %cst_49 {dimension_numbers = #tpu.dot_dimension_numbers<[1], [0], [0], [1], [0, 0, 1, 1], [], []>} : vector<16x32xf32>, vector<32x8xf32>, vector<16x8xf32> -> vector<16x8xf32>
    %c1_50 = arith.constant 1 : index
    %c0_51 = arith.constant 0 : index
    %c0_52 = arith.constant 0 : index
    %60 = vector.load %arg8[%c1_50, %c0_51, %c0_52] : memref<4x1x8xf32, #tpu.memory_space<vmem>>, vector<1x1x8xf32>
    %61 = vector.shape_cast %60 : vector<1x1x8xf32> to vector<1x8xf32>
    %62 = vector.broadcast %61 : vector<1x8xf32> to vector<16x8xf32>
    %63 = arith.addf %59, %62 : vector<16x8xf32>
    %cst_53 = arith.constant dense<0.000000e+00> : vector<16x16xf32>
    %64 = tpu.matmul %49, %56, %cst_53 {dimension_numbers = #tpu.dot_dimension_numbers<[1], [1], [0], [0], [0, 0, 1, 0], [], []>} : vector<16x8xf32>, vector<16x8xf32>, vector<16x16xf32> -> vector<16x16xf32>
    %cst_54 = arith.constant 0.353553385 : f32
    %65 = vector.broadcast %cst_54 : f32 to vector<16x16xf32>
    %66 = arith.mulf %64, %65 : vector<16x16xf32>
    %67 = arith.addf %66, %1 : vector<16x16xf32>
    %cst_55 = arith.constant dense<0xFF800000> : vector<16xf32>
    %68 = vector.multi_reduction <maximumf>, %67, %cst_55 [1] : vector<16x16xf32> to vector<16xf32>
    %69 = vector.shape_cast %68 : vector<16xf32> to vector<16x1xf32>
    %70 = vector.broadcast %69 : vector<16x1xf32> to vector<16x16xf32>
    %71 = arith.subf %67, %70 : vector<16x16xf32>
    %72 = math.exp %71 : vector<16x16xf32>
    %cst_56 = arith.constant dense<0.000000e+00> : vector<16xf32>
    %73 = vector.multi_reduction <add>, %72, %cst_56 [1] : vector<16x16xf32> to vector<16xf32>
    %74 = vector.shape_cast %73 : vector<16xf32> to vector<16x1xf32>
    %75 = tpu.reciprocal %74 {approx = true} : vector<16x1xf32> -> vector<16x1xf32>
    %76 = vector.broadcast %75 : vector<16x1xf32> to vector<16x16xf32>
    %77 = arith.mulf %72, %76 : vector<16x16xf32>
    %cst_57 = arith.constant dense<0.000000e+00> : vector<16x8xf32>
    %78 = tpu.matmul %77, %63, %cst_57 {dimension_numbers = #tpu.dot_dimension_numbers<[1], [0], [0], [1], [0, 0, 1, 1], [], []>} : vector<16x16xf32>, vector<16x8xf32>, vector<16x8xf32> -> vector<16x8xf32>
    %c1_58 = arith.constant 1 : index
    %c0_59 = arith.constant 0 : index
    %c0_60 = arith.constant 0 : index
    %79 = vector.load %arg9[%c1_58, %c0_59, %c0_60] : memref<4x8x32xf32, #tpu.memory_space<vmem>>, vector<1x8x32xf32>
    %80 = vector.shape_cast %79 : vector<1x8x32xf32> to vector<8x32xf32>
    %cst_61 = arith.constant dense<0.000000e+00> : vector<16x32xf32>
    %81 = tpu.matmul %78, %80, %cst_61 {dimension_numbers = #tpu.dot_dimension_numbers<[1], [0], [0], [1], [0, 0, 1, 1], [], []>} : vector<16x8xf32>, vector<8x32xf32>, vector<16x32xf32> -> vector<16x32xf32>
    %82 = arith.addf %42, %81 : vector<16x32xf32>
    %c2 = arith.constant 2 : index
    %c0_62 = arith.constant 0 : index
    %c0_63 = arith.constant 0 : index
    %83 = vector.load %arg3[%c2, %c0_62, %c0_63] : memref<4x32x8xf32, #tpu.memory_space<vmem>>, vector<1x32x8xf32>
    %84 = vector.shape_cast %83 : vector<1x32x8xf32> to vector<32x8xf32>
    %cst_64 = arith.constant dense<0.000000e+00> : vector<16x8xf32>
    %85 = tpu.matmul %0, %84, %cst_64 {dimension_numbers = #tpu.dot_dimension_numbers<[1], [0], [0], [1], [0, 0, 1, 1], [], []>} : vector<16x32xf32>, vector<32x8xf32>, vector<16x8xf32> -> vector<16x8xf32>
    %c2_65 = arith.constant 2 : index
    %c0_66 = arith.constant 0 : index
    %c0_67 = arith.constant 0 : index
    %86 = vector.load %arg4[%c2_65, %c0_66, %c0_67] : memref<4x1x8xf32, #tpu.memory_space<vmem>>, vector<1x1x8xf32>
    %87 = vector.shape_cast %86 : vector<1x1x8xf32> to vector<1x8xf32>
    %88 = vector.broadcast %87 : vector<1x8xf32> to vector<16x8xf32>
    %89 = arith.addf %85, %88 : vector<16x8xf32>
    %c2_68 = arith.constant 2 : index
    %c0_69 = arith.constant 0 : index
    %c0_70 = arith.constant 0 : index
    %90 = vector.load %arg5[%c2_68, %c0_69, %c0_70] : memref<4x32x8xf32, #tpu.memory_space<vmem>>, vector<1x32x8xf32>
    %91 = vector.shape_cast %90 : vector<1x32x8xf32> to vector<32x8xf32>
    %cst_71 = arith.constant dense<0.000000e+00> : vector<16x8xf32>
    %92 = tpu.matmul %0, %91, %cst_71 {dimension_numbers = #tpu.dot_dimension_numbers<[1], [0], [0], [1], [0, 0, 1, 1], [], []>} : vector<16x32xf32>, vector<32x8xf32>, vector<16x8xf32> -> vector<16x8xf32>
    %c2_72 = arith.constant 2 : index
    %c0_73 = arith.constant 0 : index
    %c0_74 = arith.constant 0 : index
    %93 = vector.load %arg6[%c2_72, %c0_73, %c0_74] : memref<4x1x8xf32, #tpu.memory_space<vmem>>, vector<1x1x8xf32>
    %94 = vector.shape_cast %93 : vector<1x1x8xf32> to vector<1x8xf32>
    %95 = vector.broadcast %94 : vector<1x8xf32> to vector<16x8xf32>
    %96 = arith.addf %92, %95 : vector<16x8xf32>
    %c2_75 = arith.constant 2 : index
    %c0_76 = arith.constant 0 : index
    %c0_77 = arith.constant 0 : index
    %97 = vector.load %arg7[%c2_75, %c0_76, %c0_77] : memref<4x32x8xf32, #tpu.memory_space<vmem>>, vector<1x32x8xf32>
    %98 = vector.shape_cast %97 : vector<1x32x8xf32> to vector<32x8xf32>
    %cst_78 = arith.constant dense<0.000000e+00> : vector<16x8xf32>
    %99 = tpu.matmul %0, %98, %cst_78 {dimension_numbers = #tpu.dot_dimension_numbers<[1], [0], [0], [1], [0, 0, 1, 1], [], []>} : vector<16x32xf32>, vector<32x8xf32>, vector<16x8xf32> -> vector<16x8xf32>
    %c2_79 = arith.constant 2 : index
    %c0_80 = arith.constant 0 : index
    %c0_81 = arith.constant 0 : index
    %100 = vector.load %arg8[%c2_79, %c0_80, %c0_81] : memref<4x1x8xf32, #tpu.memory_space<vmem>>, vector<1x1x8xf32>
    %101 = vector.shape_cast %100 : vector<1x1x8xf32> to vector<1x8xf32>
    %102 = vector.broadcast %101 : vector<1x8xf32> to vector<16x8xf32>
    %103 = arith.addf %99, %102 : vector<16x8xf32>
    %cst_82 = arith.constant dense<0.000000e+00> : vector<16x16xf32>
    %104 = tpu.matmul %89, %96, %cst_82 {dimension_numbers = #tpu.dot_dimension_numbers<[1], [1], [0], [0], [0, 0, 1, 0], [], []>} : vector<16x8xf32>, vector<16x8xf32>, vector<16x16xf32> -> vector<16x16xf32>
    %cst_83 = arith.constant 0.353553385 : f32
    %105 = vector.broadcast %cst_83 : f32 to vector<16x16xf32>
    %106 = arith.mulf %104, %105 : vector<16x16xf32>
    %107 = arith.addf %106, %1 : vector<16x16xf32>
    %cst_84 = arith.constant dense<0xFF800000> : vector<16xf32>
    %108 = vector.multi_reduction <maximumf>, %107, %cst_84 [1] : vector<16x16xf32> to vector<16xf32>
    %109 = vector.shape_cast %108 : vector<16xf32> to vector<16x1xf32>
    %110 = vector.broadcast %109 : vector<16x1xf32> to vector<16x16xf32>
    %111 = arith.subf %107, %110 : vector<16x16xf32>
    %112 = math.exp %111 : vector<16x16xf32>
    %cst_85 = arith.constant dense<0.000000e+00> : vector<16xf32>
    %113 = vector.multi_reduction <add>, %112, %cst_85 [1] : vector<16x16xf32> to vector<16xf32>
    %114 = vector.shape_cast %113 : vector<16xf32> to vector<16x1xf32>
    %115 = tpu.reciprocal %114 {approx = true} : vector<16x1xf32> -> vector<16x1xf32>
    %116 = vector.broadcast %115 : vector<16x1xf32> to vector<16x16xf32>
    %117 = arith.mulf %112, %116 : vector<16x16xf32>
    %cst_86 = arith.constant dense<0.000000e+00> : vector<16x8xf32>
    %118 = tpu.matmul %117, %103, %cst_86 {dimension_numbers = #tpu.dot_dimension_numbers<[1], [0], [0], [1], [0, 0, 1, 1], [], []>} : vector<16x16xf32>, vector<16x8xf32>, vector<16x8xf32> -> vector<16x8xf32>
    %c2_87 = arith.constant 2 : index
    %c0_88 = arith.constant 0 : index
    %c0_89 = arith.constant 0 : index
    %119 = vector.load %arg9[%c2_87, %c0_88, %c0_89] : memref<4x8x32xf32, #tpu.memory_space<vmem>>, vector<1x8x32xf32>
    %120 = vector.shape_cast %119 : vector<1x8x32xf32> to vector<8x32xf32>
    %cst_90 = arith.constant dense<0.000000e+00> : vector<16x32xf32>
    %121 = tpu.matmul %118, %120, %cst_90 {dimension_numbers = #tpu.dot_dimension_numbers<[1], [0], [0], [1], [0, 0, 1, 1], [], []>} : vector<16x8xf32>, vector<8x32xf32>, vector<16x32xf32> -> vector<16x32xf32>
    %122 = arith.addf %82, %121 : vector<16x32xf32>
    %c3 = arith.constant 3 : index
    %c0_91 = arith.constant 0 : index
    %c0_92 = arith.constant 0 : index
    %123 = vector.load %arg3[%c3, %c0_91, %c0_92] : memref<4x32x8xf32, #tpu.memory_space<vmem>>, vector<1x32x8xf32>
    %124 = vector.shape_cast %123 : vector<1x32x8xf32> to vector<32x8xf32>
    %cst_93 = arith.constant dense<0.000000e+00> : vector<16x8xf32>
    %125 = tpu.matmul %0, %124, %cst_93 {dimension_numbers = #tpu.dot_dimension_numbers<[1], [0], [0], [1], [0, 0, 1, 1], [], []>} : vector<16x32xf32>, vector<32x8xf32>, vector<16x8xf32> -> vector<16x8xf32>
    %c3_94 = arith.constant 3 : index
    %c0_95 = arith.constant 0 : index
    %c0_96 = arith.constant 0 : index
    %126 = vector.load %arg4[%c3_94, %c0_95, %c0_96] : memref<4x1x8xf32, #tpu.memory_space<vmem>>, vector<1x1x8xf32>
    %127 = vector.shape_cast %126 : vector<1x1x8xf32> to vector<1x8xf32>
    %128 = vector.broadcast %127 : vector<1x8xf32> to vector<16x8xf32>
    %129 = arith.addf %125, %128 : vector<16x8xf32>
    %c3_97 = arith.constant 3 : index
    %c0_98 = arith.constant 0 : index
    %c0_99 = arith.constant 0 : index
    %130 = vector.load %arg5[%c3_97, %c0_98, %c0_99] : memref<4x32x8xf32, #tpu.memory_space<vmem>>, vector<1x32x8xf32>
    %131 = vector.shape_cast %130 : vector<1x32x8xf32> to vector<32x8xf32>
    %cst_100 = arith.constant dense<0.000000e+00> : vector<16x8xf32>
    %132 = tpu.matmul %0, %131, %cst_100 {dimension_numbers = #tpu.dot_dimension_numbers<[1], [0], [0], [1], [0, 0, 1, 1], [], []>} : vector<16x32xf32>, vector<32x8xf32>, vector<16x8xf32> -> vector<16x8xf32>
    %c3_101 = arith.constant 3 : index
    %c0_102 = arith.constant 0 : index
    %c0_103 = arith.constant 0 : index
    %133 = vector.load %arg6[%c3_101, %c0_102, %c0_103] : memref<4x1x8xf32, #tpu.memory_space<vmem>>, vector<1x1x8xf32>
    %134 = vector.shape_cast %133 : vector<1x1x8xf32> to vector<1x8xf32>
    %135 = vector.broadcast %134 : vector<1x8xf32> to vector<16x8xf32>
    %136 = arith.addf %132, %135 : vector<16x8xf32>
    %c3_104 = arith.constant 3 : index
    %c0_105 = arith.constant 0 : index
    %c0_106 = arith.constant 0 : index
    %137 = vector.load %arg7[%c3_104, %c0_105, %c0_106] : memref<4x32x8xf32, #tpu.memory_space<vmem>>, vector<1x32x8xf32>
    %138 = vector.shape_cast %137 : vector<1x32x8xf32> to vector<32x8xf32>
    %cst_107 = arith.constant dense<0.000000e+00> : vector<16x8xf32>
    %139 = tpu.matmul %0, %138, %cst_107 {dimension_numbers = #tpu.dot_dimension_numbers<[1], [0], [0], [1], [0, 0, 1, 1], [], []>} : vector<16x32xf32>, vector<32x8xf32>, vector<16x8xf32> -> vector<16x8xf32>
    %c3_108 = arith.constant 3 : index
    %c0_109 = arith.constant 0 : index
    %c0_110 = arith.constant 0 : index
    %140 = vector.load %arg8[%c3_108, %c0_109, %c0_110] : memref<4x1x8xf32, #tpu.memory_space<vmem>>, vector<1x1x8xf32>
    %141 = vector.shape_cast %140 : vector<1x1x8xf32> to vector<1x8xf32>
    %142 = vector.broadcast %141 : vector<1x8xf32> to vector<16x8xf32>
    %143 = arith.addf %139, %142 : vector<16x8xf32>
    %cst_111 = arith.constant dense<0.000000e+00> : vector<16x16xf32>
    %144 = tpu.matmul %129, %136, %cst_111 {dimension_numbers = #tpu.dot_dimension_numbers<[1], [1], [0], [0], [0, 0, 1, 0], [], []>} : vector<16x8xf32>, vector<16x8xf32>, vector<16x16xf32> -> vector<16x16xf32>
    %cst_112 = arith.constant 0.353553385 : f32
    %145 = vector.broadcast %cst_112 : f32 to vector<16x16xf32>
    %146 = arith.mulf %144, %145 : vector<16x16xf32>
    %147 = arith.addf %146, %1 : vector<16x16xf32>
    %cst_113 = arith.constant dense<0xFF800000> : vector<16xf32>
    %148 = vector.multi_reduction <maximumf>, %147, %cst_113 [1] : vector<16x16xf32> to vector<16xf32>
    %149 = vector.shape_cast %148 : vector<16xf32> to vector<16x1xf32>
    %150 = vector.broadcast %149 : vector<16x1xf32> to vector<16x16xf32>
    %151 = arith.subf %147, %150 : vector<16x16xf32>
    %152 = math.exp %151 : vector<16x16xf32>
    %cst_114 = arith.constant dense<0.000000e+00> : vector<16xf32>
    %153 = vector.multi_reduction <add>, %152, %cst_114 [1] : vector<16x16xf32> to vector<16xf32>
    %154 = vector.shape_cast %153 : vector<16xf32> to vector<16x1xf32>
    %155 = tpu.reciprocal %154 {approx = true} : vector<16x1xf32> -> vector<16x1xf32>
    %156 = vector.broadcast %155 : vector<16x1xf32> to vector<16x16xf32>
    %157 = arith.mulf %152, %156 : vector<16x16xf32>
    %cst_115 = arith.constant dense<0.000000e+00> : vector<16x8xf32>
    %158 = tpu.matmul %157, %143, %cst_115 {dimension_numbers = #tpu.dot_dimension_numbers<[1], [0], [0], [1], [0, 0, 1, 1], [], []>} : vector<16x16xf32>, vector<16x8xf32>, vector<16x8xf32> -> vector<16x8xf32>
    %c3_116 = arith.constant 3 : index
    %c0_117 = arith.constant 0 : index
    %c0_118 = arith.constant 0 : index
    %159 = vector.load %arg9[%c3_116, %c0_117, %c0_118] : memref<4x8x32xf32, #tpu.memory_space<vmem>>, vector<1x8x32xf32>
    %160 = vector.shape_cast %159 : vector<1x8x32xf32> to vector<8x32xf32>
    %cst_119 = arith.constant dense<0.000000e+00> : vector<16x32xf32>
    %161 = tpu.matmul %158, %160, %cst_119 {dimension_numbers = #tpu.dot_dimension_numbers<[1], [0], [0], [1], [0, 0, 1, 1], [], []>} : vector<16x8xf32>, vector<8x32xf32>, vector<16x32xf32> -> vector<16x32xf32>
    %162 = arith.addf %122, %161 : vector<16x32xf32>
    %c0_120 = arith.constant 0 : index
    %c0_121 = arith.constant 0 : index
    %163 = vector.load %arg10[%c0_120, %c0_121] : memref<1x32xf32, #tpu.memory_space<vmem>>, vector<1x32xf32>
    %164 = vector.broadcast %163 : vector<1x32xf32> to vector<16x32xf32>
    %165 = arith.addf %162, %164 : vector<16x32xf32>
    %c0_122 = arith.constant 0 : index
    %c0_123 = arith.constant 0 : index
    %166 = vector.load %arg11[%c0_122, %c0_123] : memref<16x32xf32, #tpu.memory_space<vmem>>, vector<16x32xf32>
    tpu.vector_store %arg11[%c0_122, %c0_123], %165 {strides = array<i32>} : memref<16x32xf32, #tpu.memory_space<vmem>>, vector<16x32xf32>,
    return
  }
  func.func @transform_0(%arg0: i32) -> (i32, i32) {
    %c0_i32 = arith.constant 0 : i32
    %c0_i32_0 = arith.constant 0 : i32
    %c0_i32_1 = arith.constant 0 : i32
    return %c0_i32, %c0_i32_0 : i32, i32
  }
  func.func @transform_1(%arg0: i32) -> (i32, i32) {
    %c0_i32 = arith.constant 0 : i32
    %c0_i32_0 = arith.constant 0 : i32
    %c0_i32_1 = arith.constant 0 : i32
    return %c0_i32, %c0_i32_0 : i32, i32
  }
  func.func @transform_2(%arg0: i32) -> (i32, i32, i32) {
    %c0_i32 = arith.constant 0 : i32
    %c0_i32_0 = arith.constant 0 : i32
    %c0_i32_1 = arith.constant 0 : i32
    %c0_i32_2 = arith.constant 0 : i32
    return %c0_i32, %c0_i32_0, %c0_i32_1 : i32, i32, i32
  }
  func.func @transform_3(%arg0: i32) -> (i32, i32, i32) {
    %c0_i32 = arith.constant 0 : i32
    %c0_i32_0 = arith.constant 0 : i32
    %c0_i32_1 = arith.constant 0 : i32
    %c0_i32_2 = arith.constant 0 : i32
    return %c0_i32, %c0_i32_0, %c0_i32_1 : i32, i32, i32
  }
  func.func @transform_4(%arg0: i32) -> (i32, i32, i32) {
    %c0_i32 = arith.constant 0 : i32
    %c0_i32_0 = arith.constant 0 : i32
    %c0_i32_1 = arith.constant 0 : i32
    %c0_i32_2 = arith.constant 0 : i32
    return %c0_i32, %c0_i32_0, %c0_i32_1 : i32, i32, i32
  }
  func.func @transform_5(%arg0: i32) -> (i32, i32, i32) {
    %c0_i32 = arith.constant 0 : i32
    %c0_i32_0 = arith.constant 0 : i32
    %c0_i32_1 = arith.constant 0 : i32
    %c0_i32_2 = arith.constant 0 : i32
    return %c0_i32, %c0_i32_0, %c0_i32_1 : i32, i32, i32
  }
  func.func @transform_6(%arg0: i32) -> (i32, i32, i32) {
    %c0_i32 = arith.constant 0 : i32
    %c0_i32_0 = arith.constant 0 : i32
    %c0_i32_1 = arith.constant 0 : i32
    %c0_i32_2 = arith.constant 0 : i32
    return %c0_i32, %c0_i32_0, %c0_i32_1 : i32, i32, i32
  }
  func.func @transform_7(%arg0: i32) -> (i32, i32, i32) {
    %c0_i32 = arith.constant 0 : i32
    %c0_i32_0 = arith.constant 0 : i32
    %c0_i32_1 = arith.constant 0 : i32
    %c0_i32_2 = arith.constant 0 : i32
    return %c0_i32, %c0_i32_0, %c0_i32_1 : i32, i32, i32
  }
  func.func @transform_8(%arg0: i32) -> (i32, i32, i32) {
    %c0_i32 = arith.constant 0 : i32
    %c0_i32_0 = arith.constant 0 : i32
    %c0_i32_1 = arith.constant 0 : i32
    %c0_i32_2 = arith.constant 0 : i32
    return %c0_i32, %c0_i32_0, %c0_i32_1 : i32, i32, i32
  }
  func.func @transform_9(%arg0: i32) -> (i32, i32) {
    %c0_i32 = arith.constant 0 : i32
    %c0_i32_0 = arith.constant 0 : i32
    %c0_i32_1 = arith.constant 0 : i32
    return %c0_i32, %c0_i32_0 : i32, i32
  }
  func.func @transform_10(%arg0: i32) -> (i32, i32) {
    %c0_i32 = arith.constant 0 : i32
    %c0_i32_0 = arith.constant 0 : i32
    %c0_i32_1 = arith.constant 0 : i32
    return %c0_i32, %c0_i32_0 : i32, i32
  }
}

</mosaic_0001>

<bundles_post_ra>
// kernel: tpu_custom_call.1
= control target key start
LH: loop header
LB: loop body
LE: loop exit
PB: predicated region body
PF: predicated region fallthrough
CT: control target
= control target key end

     0   :  { %vm48_vm0 = vcmask 261120   ;;  %s1524_s0 = inlined_call_operand.vmem [shape: f32[16,32], index: 0, kind: input, shape index: {}]   ;;  %s1525_s1 = inlined_call_operand.vmem [shape: f32[16,16], index: 1, kind: input, shape index: {}]   ;;  %s1526_s2 = inlined_call_operand.vmem [shape: f32[4,32,8], index: 2, kind: input, shape index: {}]   ;;  %s1527_s3 = inlined_call_operand.vmem [shape: f32[4,1,8], index: 3, kind: input, shape index: {}]   ;;  %s1528_s4 = inlined_call_operand.vmem [shape: f32[4,32,8], index: 4, kind: input, shape index: {}]   ;;  %s1529_s5 = inlined_call_operand.vmem [shape: f32[4,1,8], index: 5, kind: input, shape index: {}]   ;;  %s1530_s6 = inlined_call_operand.vmem [shape: f32[4,32,8], index: 6, kind: input, shape index: {}]   ;;  %s1531_s7 = inlined_call_operand.vmem [shape: f32[4,1,8], index: 7, kind: input, shape index: {}]   ;;  %s1532_s8 = inlined_call_operand.vmem [shape: f32[4,8,32], index: 8, kind: input, shape index: {}]   ;;  %s1533_s9 = inlined_call_operand.vmem [shape: f32[1,32], index: 9, kind: input, shape index: {}]   ;;  %s1534_s10 = inlined_call_operand.hbm [shape: f32[16,32], index: 10, kind: output, shape index: {}]  }
   0x1   :  { %v81_v0 = vld [vmem:[%s1528_s4 + $0x18] sm:$0xff]  ;;  %v80_v1 = vld [vmem:[%s1528_s4 + $0x10] sm:$0xff]  ;;  %v79_v3 = vld [vmem:[%s1528_s4 + $0x8] sm:$0xff] }
   0x2   :  { %98 = vmatpush.msra.mxu1 %v81_v0  ;;  %v43_v2 = vld [vmem:[%s1526_s2 + $0x18] sm:$0xff]  ;;  %v78_v4 = vld [vmem:[%s1528_s4] sm:$0xff]  ;;  %v42_v5 = vld [vmem:[%s1526_s2 + $0x10] sm:$0xff] }
   0x3   :  { %67 = vmatpush.msra.mxu0 %v43_v2  ;;  %v1209_v6 = vld [vmem:[%s1524_s0] sm:$0xff]  ;;  %v41_v7 = vld [vmem:[%s1526_s2 + $0x8] sm:$0xff] }
   0x4   :  { %99 = vmatpush.msra.mxu1 %v80_v1  ;;  %v40_v8 = vld [vmem:[%s1526_s2] sm:$0xff] }
   0x5   :  { %68 = vmatpush.msra.mxu0 %v42_v5 }
   0x6   :  { %100 = vmatpush.msra.mxu1 %v79_v3 }
   0x7   :  { %69 = vmatpush.msra.mxu0 %v41_v7 }
   0x8   :  { %101 = vmatpush.msra.mxu1 %v78_v4 }
   0x9   :  { %954 = vmatmul.msk.f32.vlgmr.msra.gmra.mxu1 %vm48_vm0, %v1209_v6  ;;  %70 = vmatpush.msra.mxu0 %v40_v8 }
   0xa   :  { %15 = vsyncpa [#allocation3], 0  ;;  %952 = vmatmul.msk.f32.vlgmr.msra.gmra.mxu0 %vm48_vm0, %v1209_v6  ;;  %v1224_v9 = vld [vmem:[%s1524_s0 + $0x8] sm:$0xff]  ;;  %v1059_v11 = vld [vmem:[%s1529_s5] ss:$0 sm:$0xff]  ;;  %vm140_vm1 = vcmask 64512  }
   0xb   :  { %v1060_v15 = vld [vmem:[%s1527_s3] ss:$0 sm:$0xff]  ;;  %v112_v20 = vld [vmem:[%s1530_s6 + $0x18] sm:$0xff]  ;;  %v111_v21 = vld [vmem:[%s1530_s6 + $0x10] sm:$0xff]  ;;  %vm180_vm2 = vcmask 130048   ;;  %s1130_s15 = smov [#allocation2]  }
   0xc   :  { %129 = vmatpush.msra.mxu2 %v112_v20  ;;  %v110_v22 = vld [vmem:[%s1530_s6 + $0x8] sm:$0xff]  ;;  %v109_v23 = vld [vmem:[%s1530_s6] sm:$0xff]  ;;  %v974_v24 = vld [vmem:[%s1528_s4 + $0x38] sm:$0xff]  ;;  %s940_s17 = sshll.u32 %s1534_s10, 4  ;;  %s1131_s18 = smov 128   ;;  %s941_s17 = int_to_ptr.hbm [resolvable:$true] %s940_s17 }
   0xd   :  { %v973_v25 = vld [vmem:[%s1528_s4 + $0x30] sm:$0xff]  ;;  %v972_v26 = vld [vmem:[%s1528_s4 + $0x28] sm:$0xff]  ;;  %v971_v27 = vld [vmem:[%s1528_s4 + $0x20] sm:$0xff] }
   0xe   :  { %130 = vmatpush.msra.mxu2 %v111_v21  ;;  %v1271_v29 = vld [vmem:[%s1525_s1] sm:$0xff]  ;;  %v1280_v34 = vld [vmem:[%s1525_s1 + $0x8] sm:$0xff]  ;;  %v967_v38 = vld [vmem:[%s1526_s2 + $0x38] sm:$0xff] }
   0xf   :  { %v966_v39 = vld [vmem:[%s1526_s2 + $0x30] sm:$0xff]  ;;  %255 = vmatpush.msrb.mxu1 %v967_v38  ;;  %v965_v40 = vld [vmem:[%s1526_s2 + $0x28] sm:$0xff]  ;;  %v964_v41 = vld [vmem:[%s1526_s2 + $0x20] sm:$0xff] }
  0x10   :  { %131 = vmatpush.msra.mxu2 %v110_v22  ;;  %v1061_v46 = vld [vmem:[%s1531_s7] ss:$0 sm:$0xff]  ;;  %v1062_v58 = vld [vmem:[%s1529_s5 + $0x1] ss:$0 sm:$0xff]  ;;  %v981_v63 = vld [vmem:[%s1530_s6 + $0x38] sm:$0xff] }
  0x11   :  { %955 = vmatmul.msk.f32.gmra.mxu1 %vm48_vm0, %v1224_v9  ;;  %v980_v0 = vld [vmem:[%s1530_s6 + $0x30] sm:$0xff]  ;;  %v979_v1 = vld [vmem:[%s1530_s6 + $0x28] sm:$0xff]  ;;  %v978_v2 = vld [vmem:[%s1530_s6 + $0x20] sm:$0xff] }
  0x12   :  { %953 = vmatmul.msk.f32.gmra.mxu0 %vm48_vm0, %v1224_v9  ;;  %132 = vmatpush.msra.mxu2 %v109_v23 }
  0x13   :  { %956 = vmatmul.msk.f32.vlgmr.msra.gmra.mxu2 %vm48_vm0, %v1209_v6  ;;  %256 = vmatpush.msrb.mxu1 %v966_v39 }
  0x14   :  { %288 = vmatpush.msrb.mxu2 %v974_v24 }
  0x15   :  { %257 = vmatpush.msrb.mxu1 %v965_v40 }
  0x16   :  { %289 = vmatpush.msrb.mxu2 %v973_v25 }
  0x17   :  { %258 = vmatpush.msrb.mxu1 %v964_v41 }
  0x18   :  { %290 = vmatpush.msrb.mxu2 %v972_v26 }
  0x19   :  { %969 = vmatmul.msk.f32.vlgmr.msrb.gmra.mxu1 %vm48_vm0, %v1209_v6 }
  0x1a   :  { %291 = vmatpush.msrb.mxu2 %v971_v27 }
  0x1b   :  { %957 = vmatmul.msk.f32.gmra.mxu2 %vm48_vm0, %v1224_v9 }
  0x21   :  { %970 = vmatmul.msk.f32.gmra.mxu1 %vm48_vm0, %v1224_v9 }
  0x23   :  { %976 = vmatmul.msk.f32.vlgmr.msrb.gmra.mxu2 %vm48_vm0, %v1209_v6 }
  0x2b   :  { %977 = vmatmul.msk.f32.gmra.mxu2 %vm48_vm0, %v1224_v9 }
  0x86   :  { %v103_v10 = vpop.f32.mrf.mxu1 }
  0x87   :  { %v72_v14 = vpop.f32.mrf.mxu0  ;;  %v104_v16 = vadd.f32 %v1059_v11, %v103_v10 }
  0x88   :  { %v73_v17 = vadd.f32 %v1060_v15, %v72_v14 }
  0x8e   :  { %v106_v12 = vpop.f32.mrf.mxu1 }
  0x8f   :  { %v107_v13 = vadd.f32 %v1059_v11, %v106_v12  ;;  %v75_v18 = vpop.f32.mrf.mxu0  ;;  %v1063_v11 = vld [vmem:[%s1527_s3 + $0x1] ss:$0 sm:$0xff] }
  0x90   :  { %v76_v19 = vadd.f32 %v1060_v15, %v75_v18  ;;  %v232_v15 = vld [vmem:[%s1532_s8] sm:$0xff] }
  0x91   :  { %958 = vmatpush.xpose.msk.msra.mxu3 %vm140_vm1, %v107_v13 }
  0x95   :  { %959 = vmatpush.xpose.msk.msra.mxu3 %vm140_vm1, %v104_v16 }
  0x96   :  { %v134_v43 = vpop.f32.mrf.mxu2  ;;  %v260_v10 = vpop.f32.mrf.mxu1 }
  0x97   :  { %v135_v50 = vadd.f32 %v1061_v46, %v134_v43  ;;  %v261_v12 = vadd.f32 %v1063_v11, %v260_v10  ;;  %v1006_v43 = vld [vmem:[%s1528_s4 + $0x58] sm:$0xff]  ;;  %v1012_v10 = vld [vmem:[%s1530_s6 + $0x50] sm:$0xff] }
  0x98   :  { %960 = vmatmul.msk.f32.vlgmr.msra.gmra.mxu3 %vm140_vm1, %v73_v17 }
  0x99   :  { %321 = vmatpush.msrb.mxu3 %v981_v63 }
  0x9b   :  { %322 = vmatpush.msrb.mxu3 %v980_v0 }
  0x9d   :  { %323 = vmatpush.msrb.mxu3 %v979_v1  ;;  %v1066_v1 = vld [vmem:[%s1527_s3 + $0x2] ss:$0 sm:$0xff] }
  0x9e   :  { %v137_v48 = vpop.f32.mrf.mxu2  ;;  %v263_v13 = vpop.f32.mrf.mxu1 }
  0x9f   :  { %v138_v51 = vadd.f32 %v1061_v46, %v137_v48  ;;  %324 = vmatpush.msrb.mxu3 %v978_v2  ;;  %v264_v14 = vadd.f32 %v1063_v11, %v263_v13  ;;  %v1003_v46 = vld [vmem:[%s1528_s4 + $0x40] sm:$0xff]  ;;  %v1011_v11 = vld [vmem:[%s1530_s6 + $0x48] sm:$0xff] }
  0xa0   :  { %961 = vmatmul.msk.f32.gmra.mxu3 %vm140_vm1, %v76_v19  ;;  %v1064_v19 = vld [vmem:[%s1531_s7 + $0x1] ss:$0 sm:$0xff] }
  0xa1   :  { %223 = vmatpush.msrb.mxu0 %v138_v51  ;;  %474 = vmatpush.msra.mxu3 %v232_v15  ;;  %v996_v51 = vld [vmem:[%s1526_s2 + $0x40] sm:$0xff] }
  0xa3   :  { %224 = vmatpush.msrb.mxu0 %v135_v50  ;;  %v997_v50 = vld [vmem:[%s1526_s2 + $0x48] sm:$0xff] }
  0xa6   :  { %v293_v57 = vpop.f32.mrf.mxu2 }
  0xa7   :  { %v294_v61 = vadd.f32 %v1062_v58, %v293_v57  ;;  %v991_v57 = vld [vmem:[%s1532_s8 + $0x8] sm:$0xff] }
  0xa8   :  { %983 = vmatmul.msk.f32.vlgmr.msrb.gmra.mxu3 %vm48_vm0, %v1209_v6  ;;  %445 = vmatpush.msra.mxu2 %v991_v57 }
  0xae   :  { %v296_v59 = vpop.f32.mrf.mxu2 }
  0xaf   :  { %v297_v60 = vadd.f32 %v1062_v58, %v296_v59 }
  0xb0   :  { %984 = vmatmul.msk.f32.gmra.mxu3 %vm48_vm0, %v1224_v9 }
  0xb1   :  { %985 = vmatpush.xpose.msk.msra.mxu0 %vm140_vm1, %v297_v60 }
  0xb5   :  { %986 = vmatpush.xpose.msk.msra.mxu0 %vm140_vm1, %v294_v61  ;;  %v1065_v61 = vld [vmem:[%s1529_s5 + $0x2] ss:$0 sm:$0xff] }
 0x11b   :  { %v170_v28 = vpop.f32.mrf.mxu3 }
 0x11c   :  { %v176_v30 = vmul.f32 0.35355338, %v170_v28 }
 0x11e   :  { %v178_v31 = vadd.f32 %v176_v30, %v1271_v29 }
 0x120   :  { %v181_v32 = vsel %vm180_vm2, %v178_v31, -inf }
 0x121   :  { %182 = vmax.xlane.f32.xlu0 %v181_v32 }
 0x123   :  { %v173_v33 = vpop.f32.mrf.mxu3 }
 0x124   :  { %v177_v35 = vmul.f32 0.35355338, %v173_v33 }
 0x126   :  { %v179_v36 = vadd.f32 %v177_v35, %v1280_v34 }
 0x128   :  { %v184_v37 = vsel %vm180_vm2, %v179_v36, -inf }
 0x129   :  { %185 = vmax.xlane.f32.xlu0 %v184_v37 }
 0x12b   :  { %v326_v17 = vpop.f32.mrf.mxu3 }
 0x12c   :  { %v327_v21 = vadd.f32 %v1064_v19, %v326_v17 }
 0x133   :  { %v329_v20 = vpop.f32.mrf.mxu3 }
 0x134   :  { %v330_v22 = vadd.f32 %v1064_v19, %v329_v20 }
 0x136   :  { %413 = vmatpush.msra.mxu1 %v330_v22 }
 0x138   :  { %414 = vmatpush.msra.mxu1 %v327_v21 }
 0x13a   :  { %537 = vmatpush.msrb.mxu1 %v1006_v43 }
 0x194   :  { %v183_v42 = vpop.xlane.xlu0 %182 }
 0x195   :  { %v187_v44 = vsub.f32 %v178_v31, %v183_v42 }
 0x197   :  { %v189_v45 = vmul.f32 1.442695, %v187_v44  ;;  %v1005_v44 = vld [vmem:[%s1528_s4 + $0x50] sm:$0xff] }
 0x198   :  { %538 = vmatpush.msrb.mxu1 %v1005_v44 }
 0x199   :  { %1072 = vpow2.f32 %v189_v45  ;;  %v1004_v45 = vld [vmem:[%s1528_s4 + $0x48] sm:$0xff] }
 0x19a   :  { %539 = vmatpush.msrb.mxu1 %v1004_v45  ;;  %v1029_v45 = vld [vmem:[%s1526_s2 + $0x78] sm:$0xff] }
 0x19c   :  { %v186_v47 = vpop.xlane.xlu0 %185  ;;  %540 = vmatpush.msrb.mxu1 %v1003_v46  ;;  %v1028_v46 = vld [vmem:[%s1526_s2 + $0x70] sm:$0xff] }
 0x19d   :  { %v188_v49 = vsub.f32 %v179_v36, %v186_v47  ;;  %v999_v47 = vld [vmem:[%s1526_s2 + $0x58] sm:$0xff] }
 0x19f   :  { %v1073_v52 = vpop.eup %1072  ;;  %v191_v53 = vmul.f32 1.442695, %v188_v49  ;;  %v998_v49 = vld [vmem:[%s1526_s2 + $0x50] sm:$0xff] }
 0x1a0   :  { %v193_v54 = vsel %vm180_vm2, %v1073_v52, 0.0 }
 0x1a1   :  { %1074 = vpow2.f32 %v191_v53  ;;  %194 = vadd.xlane.f32.xlu1 %v193_v54 }
 0x1a7   :  { %v1075_v55 = vpop.eup %1074 }
 0x1a8   :  { %v196_v56 = vsel %vm180_vm2, %v1075_v55, 0.0 }
 0x1a9   :  { %197 = vadd.xlane.f32.xlu1 %v196_v56 }
 0x214   :  { %v195_v62 = vpop.xlane.xlu1 %194 }
 0x215   :  { %1076 = vrcp.f32 %v195_v62 }
 0x21b   :  { %v1077_v3 = vpop.eup %1076 }
 0x21c   :  { %v198_v4 = vpop.xlane.xlu1 %197  ;;  %v201_v5 = vmul.f32 %v1077_v3, %v1073_v52 }
 0x21d   :  { %1078 = vrcp.f32 %v198_v4 }
 0x21e   :  { %962 = vmatmul.msk.f32.vlgmr.msrb.gmra.mxu0 %vm180_vm2, %v201_v5 }
 0x21f   :  { %504 = vmatpush.msrb.mxu0 %v999_v47  ;;  %v1027_v47 = vld [vmem:[%s1526_s2 + $0x68] sm:$0xff] }
 0x221   :  { %505 = vmatpush.msrb.mxu0 %v998_v49  ;;  %v1023_v49 = vld [vmem:[%s1532_s8 + $0x10] sm:$0xff] }
 0x223   :  { %v1079_v7 = vpop.eup %1078  ;;  %506 = vmatpush.msrb.mxu0 %v997_v50 }
 0x224   :  { %v202_v8 = vmul.f32 %v1079_v7, %v1075_v55 }
 0x225   :  { %507 = vmatpush.msrb.mxu0 %v996_v51 }
 0x226   :  { %963 = vmatmul.msk.f32.gmra.mxu0 %vm180_vm2, %v202_v8  ;;  %v1013_v8 = vld [vmem:[%s1530_s6 + $0x58] sm:$0xff] }
 0x227   :  { %570 = vmatpush.msrb.mxu2 %v1013_v8 }
 0x229   :  { %571 = vmatpush.msrb.mxu2 %v1012_v10 }
 0x22b   :  { %572 = vmatpush.msrb.mxu2 %v1011_v11  ;;  %v1041_v11 = vld [vmem:[%s1530_s6 + $0x68] sm:$0xff] }
 0x22e   :  { %987 = vmatmul.msk.f32.vlgmr.msra.gmra.mxu0 %vm140_vm1, %v261_v12  ;;  %v1010_v12 = vld [vmem:[%s1530_s6 + $0x40] sm:$0xff] }
 0x22f   :  { %573 = vmatpush.msrb.mxu2 %v1010_v12 }
 0x236   :  { %988 = vmatmul.msk.f32.gmra.mxu0 %vm140_vm1, %v264_v14 }
 0x23e   :  { %1001 = vmatmul.msk.f32.vlgmr.msrb.gmra.mxu0 %vm48_vm0, %v1209_v6 }
 0x246   :  { %1002 = vmatmul.msk.f32.gmra.mxu0 %vm48_vm0, %v1224_v9 }
 0x29b   :  { %v226_v16 = vpop.f32.mrf.mxu0 }
 0x29c   :  { %994 = vmatmul.msk.f32.vlgmr.msra.gmra.mxu3 %vm140_vm1, %v226_v16 }
 0x2a3   :  { %v229_v18 = vpop.f32.mrf.mxu0 }
 0x2a4   :  { %995 = vmatmul.msk.f32.gmra.mxu3 %vm140_vm1, %v229_v18 }
 0x2ab   :  { %v361_v23 = vpop.f32.mrf.mxu0 }
 0x2ac   :  { %v367_v24 = vmul.f32 0.35355338, %v361_v23  ;;  %v1036_v23 = vld [vmem:[%s1528_s4 + $0x78] sm:$0xff] }
 0x2ae   :  { %v369_v25 = vadd.f32 %v367_v24, %v1271_v29  ;;  %v1035_v24 = vld [vmem:[%s1528_s4 + $0x70] sm:$0xff] }
 0x2b0   :  { %v371_v26 = vsel %vm180_vm2, %v369_v25, -inf }
 0x2b1   :  { %372 = vmax.xlane.f32.xlu2 %v371_v26 }
 0x2b3   :  { %v364_v27 = vpop.f32.mrf.mxu0 }
 0x2b4   :  { %v368_v28 = vmul.f32 0.35355338, %v364_v27  ;;  %v1033_v27 = vld [vmem:[%s1528_s4 + $0x60] sm:$0xff] }
 0x2b6   :  { %v370_v30 = vadd.f32 %v368_v28, %v1280_v34 }
 0x2b8   :  { %v374_v31 = vsel %vm180_vm2, %v370_v30, -inf }
 0x2b9   :  { %375 = vmax.xlane.f32.xlu2 %v374_v31 }
 0x2bb   :  { %v509_v0 = vpop.f32.mrf.mxu0 }
 0x2bc   :  { %v510_v3 = vadd.f32 %v1066_v1, %v509_v0  ;;  %v1069_v0 = vld [vmem:[%s1527_s3 + $0x3] ss:$0 sm:$0xff] }
 0x2c3   :  { %v512_v4 = vpop.f32.mrf.mxu0 }
 0x2c4   :  { %v513_v5 = vadd.f32 %v1066_v1, %v512_v4  ;;  %v1043_v4 = vld [vmem:[%s1530_s6 + $0x78] sm:$0xff] }
 0x31f   :  { %v1398_v7 = vpop.f32.mrf.mxu3 }
 0x324   :  { %v373_v32 = vpop.xlane.xlu2 %372 }
 0x325   :  { %v377_v33 = vsub.f32 %v369_v25, %v373_v32  ;;  %v1034_v25 = vld [vmem:[%s1528_s4 + $0x68] sm:$0xff]  ;;  %s938_s4 = sshll.u32 %s1130_s15, 4  ;;  %s939_s4 = int_to_ptr.vmem [resolvable:$true] %s938_s4 }
 0x327   :  { %v379_v35 = vmul.f32 1.442695, %v377_v33  ;;  %v1414_v13 = vpop.f32.mrf.mxu3  ;;  %v1067_v33 = vld [vmem:[%s1531_s7 + $0x2] ss:$0 sm:$0xff] }
 0x329   :  { %1080 = vpow2.f32 %v379_v35 }
 0x32c   :  { %v376_v36 = vpop.xlane.xlu2 %375 }
 0x32d   :  { %v378_v37 = vsub.f32 %v370_v30, %v376_v36 }
 0x32f   :  { %v1081_v38 = vpop.eup %1080  ;;  %v381_v39 = vmul.f32 1.442695, %v378_v37 }
 0x330   :  { %v383_v40 = vsel %vm180_vm2, %v1081_v38, 0.0 }
 0x331   :  { %1082 = vpow2.f32 %v381_v39  ;;  %384 = vadd.xlane.f32.xlu0 %v383_v40 }
 0x337   :  { %v1083_v41 = vpop.eup %1082 }
 0x338   :  { %v386_v42 = vsel %vm180_vm2, %v1083_v41, 0.0 }
 0x339   :  { %387 = vadd.xlane.f32.xlu1 %v386_v42 }
 0x3a4   :  { %v385_v48 = vpop.xlane.xlu0 %384 }
 0x3a5   :  { %1084 = vrcp.f32 %v385_v48  ;;  %v1026_v48 = vld [vmem:[%s1526_s2 + $0x60] sm:$0xff] }
 0x3ab   :  { %v1085_v52 = vpop.eup %1084 }
 0x3ac   :  { %v391_v53 = vmul.f32 %v1085_v52, %v1081_v38  ;;  %v388_v54 = vpop.xlane.xlu1 %387  ;;  %v1068_v52 = vld [vmem:[%s1529_s5 + $0x3] ss:$0 sm:$0xff] }
 0x3ad   :  { %1086 = vrcp.f32 %v388_v54 }
 0x3ae   :  { %989 = vmatmul.msk.f32.vlgmr.msra.gmra.mxu1 %vm180_vm2, %v391_v53 }
 0x3af   :  { %694 = vmatpush.msra.mxu1 %v1023_v49 }
 0x3b3   :  { %v1087_v55 = vpop.eup %1086 }
 0x3b4   :  { %v392_v56 = vmul.f32 %v1087_v55, %v1083_v41 }
 0x3b6   :  { %990 = vmatmul.msk.f32.gmra.mxu1 %vm180_vm2, %v392_v56 }
 0x3be   :  { %1008 = vmatmul.msk.f32.vlgmr.msrb.gmra.mxu1 %vm48_vm0, %v1209_v6 }
 0x3c6   :  { %1009 = vmatmul.msk.f32.gmra.mxu1 %vm48_vm0, %v1224_v9 }
 0x42b   :  { %v416_v58 = vpop.f32.mrf.mxu1 }
 0x42c   :  { %992 = vmatmul.msk.f32.vlgmr.msra.gmra.mxu2 %vm140_vm1, %v416_v58 }
 0x42d   :  { %726 = vmatpush.msra.mxu2 %v1029_v45 }
 0x42f   :  { %727 = vmatpush.msra.mxu2 %v1028_v46  ;;  %v1071_v46 = vld [vmem:[%s1533_s9] ss:$0 sm:$0xff]  ;;  %s1132_s9 = smov 8  }
 0x431   :  { %728 = vmatpush.msra.mxu2 %v1027_v47 }
 0x433   :  { %v419_v59 = vpop.f32.mrf.mxu1  ;;  %729 = vmatpush.msra.mxu2 %v1026_v48 }
 0x434   :  { %993 = vmatmul.msk.f32.gmra.mxu2 %vm140_vm1, %v419_v59 }
 0x43b   :  { %v542_v60 = vpop.f32.mrf.mxu1 }
 0x43c   :  { %v543_v2 = vadd.f32 %v1065_v61, %v542_v60  ;;  %1015 = vmatmul.msk.f32.vlgmr.msrb.gmra.mxu2 %vm48_vm0, %v1209_v6 }
 0x443   :  { %v545_v62 = vpop.f32.mrf.mxu1 }
 0x444   :  { %v546_v63 = vadd.f32 %v1065_v61, %v545_v62  ;;  %1016 = vmatmul.msk.f32.gmra.mxu2 %vm48_vm0, %v1224_v9 }
 0x446   :  { %1017 = vmatpush.xpose.msk.msrb.mxu3 %vm140_vm1, %v546_v63 }
 0x44a   :  { %1018 = vmatpush.xpose.msk.msrb.mxu3 %vm140_vm1, %v543_v2 }
 0x44c   :  { %1031 = vmatmul.msk.f32.vlgmr.msra.gmra.mxu2 %vm48_vm0, %v1209_v6 }
 0x44d   :  { %1019 = vmatmul.msk.f32.vlgmr.msrb.gmra.mxu3 %vm140_vm1, %v510_v3 }
 0x44e   :  { %759 = vmatpush.msra.mxu3 %v1036_v23 }
 0x450   :  { %760 = vmatpush.msra.mxu3 %v1035_v24  ;;  %v1070_v24 = vld [vmem:[%s1531_s7 + $0x3] ss:$0 sm:$0xff] }
 0x452   :  { %761 = vmatpush.msra.mxu3 %v1034_v25 }
 0x454   :  { %762 = vmatpush.msra.mxu3 %v1033_v27  ;;  %1032 = vmatmul.msk.f32.gmra.mxu2 %vm48_vm0, %v1224_v9 }
 0x455   :  { %1020 = vmatmul.msk.f32.gmra.mxu3 %vm140_vm1, %v513_v5  ;;  %v1042_v5 = vld [vmem:[%s1530_s6 + $0x70] sm:$0xff] }
 0x45d   :  { %1038 = vmatmul.msk.f32.vlgmr.msra.gmra.mxu3 %vm48_vm0, %v1209_v6 }
 0x465   :  { %1039 = vmatmul.msk.f32.gmra.mxu3 %vm48_vm0, %v1224_v9 }
 0x4af   :  { %v1422_v22 = vpop.f32.mrf.mxu2 }
 0x4b0   :  { %v477_v8 = vadd.f32 %v1398_v7, %v1422_v22 }
 0x4b7   :  { %v1433_v26 = vpop.f32.mrf.mxu2 }
 0x4b8   :  { %v480_v7 = vadd.f32 %v1414_v13, %v1433_v26 }
 0x4bf   :  { %v575_v30 = vpop.f32.mrf.mxu2 }
 0x4c0   :  { %v576_v38 = vadd.f32 %v1067_v33, %v575_v30 }
 0x4c7   :  { %v578_v36 = vpop.f32.mrf.mxu2 }
 0x4c8   :  { %v579_v39 = vadd.f32 %v1067_v33, %v578_v36 }
 0x4ca   :  { %662 = vmatpush.msra.mxu0 %v579_v39 }
 0x4cc   :  { %663 = vmatpush.msra.mxu0 %v576_v38 }
 0x4ce   :  { %792 = vmatpush.msrb.mxu0 %v1043_v4 }
 0x4cf   :  { %v731_v63 = vpop.f32.mrf.mxu2 }
 0x4d0   :  { %v610_v14 = vpop.f32.mrf.mxu3  ;;  %v732_v1 = vadd.f32 %v1069_v0, %v731_v63  ;;  %793 = vmatpush.msrb.mxu0 %v1042_v5 }
 0x4d1   :  { %v616_v15 = vmul.f32 0.35355338, %v610_v14  ;;  %v1040_v14 = vld [vmem:[%s1530_s6 + $0x60] sm:$0xff] }
 0x4d2   :  { %794 = vmatpush.msrb.mxu0 %v1041_v11 }
 0x4d3   :  { %v618_v16 = vadd.f32 %v616_v15, %v1271_v29 }
 0x4d4   :  { %795 = vmatpush.msrb.mxu0 %v1040_v14 }
 0x4d5   :  { %v620_v17 = vsel %vm180_vm2, %v618_v16, -inf }
 0x4d6   :  { %621 = vmax.xlane.f32.xlu2 %v620_v17 }
 0x4d7   :  { %v734_v2 = vpop.f32.mrf.mxu2 }
 0x4d8   :  { %v613_v18 = vpop.f32.mrf.mxu3  ;;  %v735_v3 = vadd.f32 %v1069_v0, %v734_v2 }
 0x4d9   :  { %v617_v19 = vmul.f32 0.35355338, %v613_v18 }
 0x4db   :  { %v619_v20 = vadd.f32 %v617_v19, %v1280_v34 }
 0x4dd   :  { %v623_v21 = vsel %vm180_vm2, %v619_v20, -inf }
 0x4de   :  { %624 = vmax.xlane.f32.xlu0 %v623_v21 }
 0x4e0   :  { %v764_v51 = vpop.f32.mrf.mxu3 }
 0x4e1   :  { %v765_v58 = vadd.f32 %v1068_v52, %v764_v51 }
 0x4e8   :  { %v767_v56 = vpop.f32.mrf.mxu3 }
 0x4e9   :  { %v768_v57 = vadd.f32 %v1068_v52, %v767_v56 }
 0x4eb   :  { %1047 = vmatpush.xpose.msk.msrb.mxu1 %vm140_vm1, %v768_v57 }
 0x4ef   :  { %1048 = vmatpush.xpose.msk.msrb.mxu1 %vm140_vm1, %v765_v58 }
 0x549   :  { %v622_v28 = vpop.xlane.xlu2 %621 }
 0x54a   :  { %v626_v31 = vsub.f32 %v618_v16, %v622_v28 }
 0x54c   :  { %v628_v32 = vmul.f32 1.442695, %v626_v31 }
 0x54e   :  { %1088 = vpow2.f32 %v628_v32 }
 0x551   :  { %v625_v35 = vpop.xlane.xlu0 %624 }
 0x552   :  { %v627_v37 = vsub.f32 %v619_v20, %v625_v35 }
 0x554   :  { %v1089_v40 = vpop.eup %1088  ;;  %v630_v41 = vmul.f32 1.442695, %v627_v37  ;;  %v1053_v37 = vld [vmem:[%s1532_s8 + $0x18] sm:$0xff] }
 0x555   :  { %v632_v42 = vsel %vm180_vm2, %v1089_v40, 0.0  ;;  %916 = vmatpush.msrb.mxu3 %v1053_v37 }
 0x556   :  { %1090 = vpow2.f32 %v630_v41  ;;  %633 = vadd.xlane.f32.xlu1 %v632_v42 }
 0x55c   :  { %v1091_v43 = vpop.eup %1090 }
 0x55d   :  { %v635_v44 = vsel %vm180_vm2, %v1091_v43, 0.0 }
 0x55e   :  { %636 = vadd.xlane.f32.xlu2 %v635_v44 }
 0x5c9   :  { %v634_v50 = vpop.xlane.xlu1 %633 }
 0x5ca   :  { %1092 = vrcp.f32 %v634_v50 }
 0x5d0   :  { %v1093_v53 = vpop.eup %1092 }
 0x5d1   :  { %v640_v54 = vmul.f32 %v1093_v53, %v1089_v40  ;;  %v637_v55 = vpop.xlane.xlu2 %636 }
 0x5d2   :  { %1094 = vrcp.f32 %v637_v55 }
 0x5d3   :  { %1021 = vmatmul.msk.f32.vlgmr.msra.gmra.mxu0 %vm180_vm2, %v640_v54 }
 0x5d8   :  { %v1095_v59 = vpop.eup %1094 }
 0x5d9   :  { %v641_v60 = vmul.f32 %v1095_v59, %v1091_v43 }
 0x5db   :  { %1022 = vmatmul.msk.f32.gmra.mxu0 %vm180_vm2, %v641_v60 }
 0x5e3   :  { %1045 = vmatmul.msk.f32.vlgmr.msrb.gmra.mxu0 %vm48_vm0, %v1209_v6 }
 0x5eb   :  { %1046 = vmatmul.msk.f32.gmra.mxu0 %vm48_vm0, %v1224_v9 }
 0x650   :  { %v665_v61 = vpop.f32.mrf.mxu0 }
 0x651   :  { %1024 = vmatmul.msk.f32.vlgmr.msra.gmra.mxu1 %vm140_vm1, %v665_v61 }
 0x658   :  { %v668_v62 = vpop.f32.mrf.mxu0 }
 0x659   :  { %1025 = vmatmul.msk.f32.gmra.mxu1 %vm140_vm1, %v668_v62 }
 0x660   :  { %v797_v13 = vpop.f32.mrf.mxu0 }
 0x661   :  { %1049 = vmatmul.msk.f32.vlgmr.msrb.gmra.mxu1 %vm140_vm1, %v732_v1 }
 0x668   :  { %v800_v26 = vpop.f32.mrf.mxu0 }
 0x669   :  { %1050 = vmatmul.msk.f32.gmra.mxu1 %vm140_vm1, %v735_v3  ;;  %v801_v28 = vadd.f32 %v1070_v24, %v800_v26 }
 0x66b   :  { %884 = vmatpush.msrb.mxu2 %v801_v28 }
 0x6ce   :  { %v696_v10 = vpop.f32.mrf.mxu1 }
 0x6cf   :  { %v702_v12 = vadd.f32 %v696_v10, %v477_v8 }
 0x6d6   :  { %v699_v15 = vpop.f32.mrf.mxu1 }
 0x6d7   :  { %v703_v16 = vadd.f32 %v699_v15, %v480_v7 }
 0x6de   :  { %v832_v17 = vpop.f32.mrf.mxu1 }
 0x6df   :  { %v838_v18 = vmul.f32 0.35355338, %v832_v17 }
 0x6e1   :  { %v840_v19 = vadd.f32 %v838_v18, %v1271_v29  ;;  %v798_v29 = vadd.f32 %v1070_v24, %v797_v13 }
 0x6e3   :  { %v842_v20 = vsel %vm180_vm2, %v840_v19, -inf  ;;  %885 = vmatpush.msrb.mxu2 %v798_v29 }
 0x6e4   :  { %843 = vmax.xlane.f32.xlu0 %v842_v20 }
 0x6e6   :  { %v835_v21 = vpop.f32.mrf.mxu1 }
 0x6e7   :  { %v839_v22 = vmul.f32 0.35355338, %v835_v21 }
 0x6e9   :  { %v841_v23 = vadd.f32 %v839_v22, %v1280_v34 }
 0x6eb   :  { %v845_v6 = vsel %vm180_vm2, %v841_v23, -inf }
 0x6ec   :  { %846 = vmax.xlane.f32.xlu1 %v845_v6 }
 0x757   :  { %v844_v9 = vpop.xlane.xlu0 %843 }
 0x758   :  { %v848_v25 = vsub.f32 %v840_v19, %v844_v9 }
 0x75a   :  { %v850_v27 = vmul.f32 1.442695, %v848_v25 }
 0x75c   :  { %1096 = vpow2.f32 %v850_v27 }
 0x75f   :  { %v847_v30 = vpop.xlane.xlu1 %846 }
 0x760   :  { %v849_v31 = vsub.f32 %v841_v23, %v847_v30 }
 0x762   :  { %v1097_v34 = vpop.eup %1096  ;;  %v852_v32 = vmul.f32 1.442695, %v849_v31 }
 0x763   :  { %v854_v33 = vsel %vm180_vm2, %v1097_v34, 0.0 }
 0x764   :  { %1098 = vpow2.f32 %v852_v32  ;;  %855 = vadd.xlane.f32.xlu2 %v854_v33 }
 0x76a   :  { %v1099_v35 = vpop.eup %1098 }
 0x76b   :  { %v857_v36 = vsel %vm180_vm2, %v1099_v35, 0.0 }
 0x76c   :  { %858 = vadd.xlane.f32.xlu0 %v857_v36 }
 0x7d7   :  { %v856_v38 = vpop.xlane.xlu2 %855 }
 0x7d8   :  { %1100 = vrcp.f32 %v856_v38 }
 0x7de   :  { %v1101_v39 = vpop.eup %1100 }
 0x7df   :  { %v862_v40 = vmul.f32 %v1101_v39, %v1097_v34  ;;  %v859_v41 = vpop.xlane.xlu0 %858 }
 0x7e0   :  { %1102 = vrcp.f32 %v859_v41 }
 0x7e1   :  { %1051 = vmatmul.msk.f32.vlgmr.msrb.gmra.mxu2 %vm180_vm2, %v862_v40 }
 0x7e6   :  { %v1103_v42 = vpop.eup %1102 }
 0x7e7   :  { %v863_v43 = vmul.f32 %v1103_v42, %v1099_v35 }
 0x7e9   :  { %1052 = vmatmul.msk.f32.gmra.mxu2 %vm180_vm2, %v863_v43 }
 0x864   :  { %v887_v44 = vpop.f32.mrf.mxu2 }
 0x865   :  { %1054 = vmatmul.msk.f32.vlgmr.msrb.gmra.mxu3 %vm140_vm1, %v887_v44 }
 0x86c   :  { %v890_v45 = vpop.f32.mrf.mxu2 }
 0x86d   :  { %1055 = vmatmul.msk.f32.gmra.mxu3 %vm140_vm1, %v890_v45 }
 0x8e8   :  { %v918_v47 = vpop.f32.mrf.mxu3 }
 0x8e9   :  { %v924_v48 = vadd.f32 %v918_v47, %v702_v12 }
 0x8eb   :  { %v930_v49 = vadd.f32 %v1071_v46, %v924_v48 }
 0x8ed   :  { %932 = vst.msk [vmem:[#allocation2] sm:$0xff] %vm48_vm0, %v930_v49 }
 0x8f0   :  { %v921_v50 = vpop.f32.mrf.mxu3 }
 0x8f1   :  { %v925_v51 = vadd.f32 %v921_v50, %v703_v16 }
 0x8f3   :  { %v931_v52 = vadd.f32 %v1071_v46, %v925_v51 }
 0x8f5   :  { %933 = vst.msk [vmem:[#allocation2 + $0x8] sm:$0xff] %vm48_vm0, %v931_v52 }
 0x8f6   :  { %946 = dma.vmem_to_hbm [thread:$0]  %s939_s4, 256, %s941_s17, [#allocation3], %s1131_s18, %s1131_s18, %s1132_s9  }
 0x8f7   :  { %1128 = dma.done.wait [#allocation3], 256  }
 0x8f8   :  { %1129 = vsyncadd [#allocation3], 4294967040 }
 0x8f9   :  { %951 = vsyncpa [#allocation3], 1 }

</bundles_post_ra>
